<compile_context>
chip_gen: v6e
topology: v6e:2x2x1
jax: 0.10.0
libtpu: 0.0.40
codegen_flags: <defaults>
</compile_context>

<pallas_src>
import jax
import jax.numpy as jnp
import numpy as np
from jax.experimental import pallas as pl
from jax.experimental.pallas import tpu as pltpu


_TM_CAP = 512    # batch tile cap (batch-resident below this -> W streams once)
_TN_CAP = 1024   # output-feature tile cap
_TK_CAP = 1024   # reduction tile cap


def _round_up(v, m):
    return ((v + m - 1) // m) * m


def _pick_tile(dim_aligned, cap, align):
    """Largest multiple of `align` that divides `dim_aligned`, capped at `cap`."""
    cap = min(cap, dim_aligned)
    best = align
    t = align
    while t <= cap:
        if dim_aligned % t == 0:
            best = t
        t += align
    return best


def _linear_kernel(x_ref, w_ref, o_ref):
    # x_ref: [tm, tk] (compute dtype), w_ref: [tk, tn] (pre-transposed weight),
    # o_ref: [tm, tn] f32 — resident accumulator across the k grid axis.
    @pl.when(pl.program_id(2) == 0)
    def _():
        o_ref[...] = jnp.zeros_like(o_ref)

    o_ref[...] += jnp.dot(x_ref[...], w_ref[...],
                          preferred_element_type=jnp.float32)


class SGLNetPallas:
    """Pallas-TPU equivalent of SGLNet: y = x @ weight.T (bias-free Linear)."""

    def __init__(self, weight, compute_dtype=None):
        # weight: [output_size, input_size]  (PyTorch nn.Linear layout)
        self.weight = weight
        self.out_features, self.in_features = weight.shape
        self.compute_dtype = np.dtype(compute_dtype or weight.dtype)

        n_al = _round_up(self.out_features, 128)
        k_al = _round_up(self.in_features, 128)
        # Divisor-aware tiles: tn | n_pad and tk | k_pad, so the prepared
        # weight needs no further padding and awkward sizes add no dead FLOPs.
        self.tn = _pick_tile(n_al, _TN_CAP, 128)
        self.tk = _pick_tile(k_al, _TK_CAP, 128)
        self.n_pad, self.k_pad = n_al, k_al

        # One-time parameter prep: transpose -> pad -> cast (paid once, not per
        # forward; removes the per-call extra HBM pass over W).
        wt = weight.T  # [K, N]
        if wt.shape != (self.k_pad, self.n_pad):
            wt = jnp.pad(wt, ((0, self.k_pad - wt.shape[0]),
                              (0, self.n_pad - wt.shape[1])))
        self.weight_t = wt.astype(self.compute_dtype)

    def __call__(self, x, *, force_pallas=False):
        *lead, k = x.shape
        assert k == self.in_features, "input feature dim mismatch"
        x2d = x.reshape(-1, k)
        m = x2d.shape[0]
        n = self.out_features

        if not force_pallas and m * n * k < (1 << 24):
            # Tiny problem: a custom kernel is pure launch overhead; XLA wins.
            y = jnp.dot(x2d.astype(self.compute_dtype),
                        self.weight_t[:k, :n],
                        preferred_element_type=jnp.float32)
        else:
            y = self._pallas_matmul(x2d)
        return y.reshape(*lead, n)

    def _pallas_matmul(self, x2d):
        m, k = x2d.shape
        cd = self.compute_dtype
        itemsize = cd.itemsize
        sub = 16 if itemsize == 2 else 8          # bf16 sublane packing
        tn, tk = self.tn, self.tk
        n_pad, k_pad = self.n_pad, self.k_pad

        m_al = _round_up(m, sub)
        # Batch-resident tm for small/moderate M (weight streams through HBM
        # exactly once); for large M prefer a divisor of m_al, else pad to 512.
        tm = _pick_tile(m_al, _TM_CAP, sub)
        if tm < 256 and m_al > _TM_CAP:
            tm = _TM_CAP
        m_pad = _round_up(m_al, tm)

        # v7x has 2 TensorCores: give a parallel axis >= 2 blocks if possible.
        if m_pad // tm == 1 and n_pad // tn == 1:
            if n_pad >= 256:
                tn = _pick_tile(n_pad, n_pad // 2, 128)
            elif m_pad >= 2 * sub:
                tm = _pick_tile(m_pad, m_pad // 2, sub)

        grid = (m_pad // tm, n_pad // tn, k_pad // tk)

        x_p = x2d
        if (m_pad, k_pad) != x2d.shape:
            x_p = jnp.pad(x2d, ((0, m_pad - m), (0, k_pad - k)))
        x_p = x_p.astype(cd)

        # HBM traffic including grid re-fetch factors.
        bytes_accessed = (m_pad * k_pad * itemsize * grid[1]
                          + k_pad * n_pad * itemsize * grid[0]
                          + m_pad * n_pad * 4)
        cost = pl.CostEstimate(flops=2 * m_pad * n_pad * k_pad,
                               transcendentals=0,
                               bytes_accessed=int(bytes_accessed))

        # Explicit VMEM budget from the actual tiles (+ headroom); fits the
        # v7x 64 MiB ceiling while letting v5e/v6e take the full large tiles.
        vmem_bytes = (2 * (tm * tk + tk * tn) * itemsize   # double-buffered inputs
                      + 2 * tm * tn * 4                    # resident f32 output
                      + (4 << 20))                         # headroom
        vmem_limit = int(min(max(vmem_bytes, 16 << 20), 56 << 20))

        out = pl.pallas_call(
            _linear_kernel,
            out_shape=jax.ShapeDtypeStruct((m_pad, n_pad), jnp.float32),
            grid_spec=pltpu.PrefetchScalarGridSpec(
                num_scalar_prefetch=0,
                grid=grid,
                in_specs=[
                    pl.BlockSpec((tm, tk), lambda i, j, kk: (i, kk)),   # x tile
                    pl.BlockSpec((tk, tn), lambda i, j, kk: (kk, j)),   # W^T tile
                ],
                out_specs=pl.BlockSpec((tm, tn), lambda i, j, kk: (i, j)),
            ),
            compiler_params=pltpu.CompilerParams(
                dimension_semantics=("parallel", "parallel", "arbitrary"),
                vmem_limit_bytes=vmem_limit,
            ),
            cost_estimate=cost,
        )(x_p, self.weight_t)

        if (m_pad, n_pad) != (m, self.out_features):
            out = out[:m, :self.out_features]
        return out


if __name__ == "__main__":
    key = jax.random.PRNGKey(0)
    kx1, kw1, kx2, kw2 = jax.random.split(key, 4)

    # --- Demo 1: spec's tiny shape, forced through the Pallas path (f32) ---
    batch, input_size, output_size = 8, 32, 16
    w1 = jax.random.normal(kw1, (output_size, input_size), dtype=jnp.float32)  # N(0,1) init
    x1 = jax.random.normal(kx1, (batch, input_size), dtype=jnp.float32)
    net1 = SGLNetPallas(w1)
    y1 = jax.block_until_ready(net1(x1, force_pallas=True))
    y1_ref = x1 @ w1.T
    assert y1.shape == (batch, output_size)
    assert jnp.allclose(y1, y1_ref, atol=1e-5, rtol=1e-5)

    # --- Demo 2: moderate shape, bf16 compute / f32 accumulate, natural dispatch ---
    M2, K2, N2 = 256, 512, 384
    w2 = jax.random.normal(kw2, (N2, K2), dtype=jnp.float32)
    x2 = jax.random.normal(kx2, (M2, K2), dtype=jnp.float32)
    net2 = SGLNetPallas(w2, compute_dtype=jnp.bfloat16)
    y2 = jax.block_until_ready(net2(x2))
    y2_ref = jnp.dot(x2.astype(jnp.bfloat16), w2.T.astype(jnp.bfloat16),
                     preferred_element_type=jnp.float32)
    assert y2.shape == (M2, N2)
    assert jnp.allclose(y2, y2_ref, atol=5e-2, rtol=5e-2)

    print("KERNEL_OK")
</pallas_src>

<mosaic_0001>
module attributes {stable_mosaic.version = 11 : i64} {
  func.func @_linear_kernel(%arg0: i32, %arg1: i32, %arg2: i32, %arg3: memref<8x128xf32, #tpu.memory_space<vmem>>, %arg4: memref<128x128xf32, #tpu.memory_space<vmem>>, %arg5: memref<8x128xf32, #tpu.memory_space<vmem>>) attributes {dimension_semantics = [#tpu.dimension_semantics<parallel>, #tpu.dimension_semantics<parallel>, #tpu.dimension_semantics<arbitrary>], iteration_bounds = array<i64: 1, 1, 1>, scalar_prefetch = 0 : i64, scratch_operands = 0 : i64, tpu.core_type = #tpu.core_type<tc>, window_params = [{transform_indices = @transform_0, window_bounds = array<i64: 8, 128>}, {transform_indices = @transform_1, window_bounds = array<i64: 128, 128>}, {transform_indices = @transform_2, window_bounds = array<i64: 8, 128>}]} {
    %c0_i32 = arith.constant 0 : i32
    %0 = arith.cmpi eq, %arg2, %c0_i32 : i32
    %1 = arith.extui %0 : i1 to i32
    %c0_i32_0 = arith.constant 0 : i32
    %2 = arith.cmpi ne, %1, %c0_i32_0 : i32
    scf.if %2 {
      %cst_8 = arith.constant 0.000000e+00 : f32
      %9 = vector.broadcast %cst_8 : f32 to vector<8x128xf32>
      %c0_9 = arith.constant 0 : index
      %c0_10 = arith.constant 0 : index
      %10 = vector.load %arg5[%c0_9, %c0_10] : memref<8x128xf32, #tpu.memory_space<vmem>>, vector<8x128xf32>
      tpu.vector_store %arg5[%c0_9, %c0_10], %9 {strides = array<i32>} : memref<8x128xf32, #tpu.memory_space<vmem>>, vector<8x128xf32>,
    } else {
    }
    %c0 = arith.constant 0 : index
    %c0_1 = arith.constant 0 : index
    %3 = vector.load %arg5[%c0, %c0_1] : memref<8x128xf32, #tpu.memory_space<vmem>>, vector<8x128xf32>
    %c0_2 = arith.constant 0 : index
    %c0_3 = arith.constant 0 : index
    %4 = vector.load %arg3[%c0_2, %c0_3] : memref<8x128xf32, #tpu.memory_space<vmem>>, vector<8x128xf32>
    %c0_4 = arith.constant 0 : index
    %c0_5 = arith.constant 0 : index
    %5 = vector.load %arg4[%c0_4, %c0_5] : memref<128x128xf32, #tpu.memory_space<vmem>>, vector<128x128xf32>
    %cst = arith.constant dense<0.000000e+00> : vector<8x128xf32>
    %6 = tpu.matmul %4, %5, %cst {dimension_numbers = #tpu.dot_dimension_numbers<[1], [0], [0], [1], [0, 0, 1, 1], [], []>} : vector<8x128xf32>, vector<128x128xf32>, vector<8x128xf32> -> vector<8x128xf32>
    %7 = arith.addf %3, %6 : vector<8x128xf32>
    %c0_6 = arith.constant 0 : index
    %c0_7 = arith.constant 0 : index
    %8 = vector.load %arg5[%c0_6, %c0_7] : memref<8x128xf32, #tpu.memory_space<vmem>>, vector<8x128xf32>
    tpu.vector_store %arg5[%c0_6, %c0_7], %7 {strides = array<i32>} : memref<8x128xf32, #tpu.memory_space<vmem>>, vector<8x128xf32>,
    return
  }
  func.func @transform_0(%arg0: i32, %arg1: i32, %arg2: i32) -> (i32, i32) {
    %c0_i32 = arith.constant 0 : i32
    return %arg0, %arg2 : i32, i32
  }
  func.func @transform_1(%arg0: i32, %arg1: i32, %arg2: i32) -> (i32, i32) {
    %c0_i32 = arith.constant 0 : i32
    return %arg2, %arg1 : i32, i32
  }
  func.func @transform_2(%arg0: i32, %arg1: i32, %arg2: i32) -> (i32, i32) {
    %c0_i32 = arith.constant 0 : i32
    return %arg0, %arg1 : i32, i32
  }
}

</mosaic_0001>

<bundles_post_ra>
// kernel: tpu_custom_call.1
= control target key start
LH: loop header
LB: loop body
LE: loop exit
PB: predicated region body
PF: predicated region fallthrough
CT: control target
= control target key end

     0   :  { %7 = vsyncpa [#allocation3], 0  ;;  %s305_s0 = inlined_call_operand.hbm [shape: f32[8,128], index: 0, kind: input, shape index: {}]   ;;  %s306_s1 = inlined_call_operand.hbm [shape: f32[128,128], index: 1, kind: input, shape index: {}]   ;;  %s307_s2 = inlined_call_operand.hbm [shape: f32[8,128], index: 2, kind: output, shape index: {}]  }
   0x1   :  { %8 = vsyncpa [#allocation6], 0 }
   0x2   :  { %9 = vsyncpa [#allocation4], 0  ;;  %s274_s9 = smov [#allocation2]   ;;  %s275_s11 = smov [#allocation5]  }
   0x3   :  { %s16_s10 = sshll.u32 %s274_s9, 4  ;;  %s25_s12 = sshll.u32 %s275_s11, 4  ;;  %s17_s10 = int_to_ptr.vmem [resolvable:$true] %s16_s10  ;;  %s26_s12 = int_to_ptr.vmem [resolvable:$true] %s25_s12 }
   0x4   :  { %s216_s13 = scalar_lea.vmem %s17_s10, 128  ;;  %p221_p1 = scmp.lt.s32.totalorder %s17_s10, %s17_s10 }
   0x5   :  { %p217_p0 = scmp.ne.s32.totalorder %s17_s10, %s216_s13  ;;  %p222_p2 = scmp.lt.s32.totalorder %s216_s13, %s216_s13 }
   0x7   :  { %p223_p3 = por %p222_p2, %p221_p1 }
   0x9   :  { %p224_p4 = pnand %p223_p3, %p217_p0 }
   0xb   :  { %227 = shalt.err (!%p224_p4)
}
   0xc   :  { %19 = dma.hbm_to_vmem [thread:$0]  %s305_s0, 128, %s17_s10, [#allocation3]  }
   0xd   :  { %s236_s16 = scalar_lea.vmem %s26_s12, 2048  ;;  %p241_p6 = scmp.lt.s32.totalorder %s26_s12, %s26_s12 }
   0xe   :  { %p237_p5 = scmp.ne.s32.totalorder %s26_s12, %s236_s16  ;;  %p242_p7 = scmp.lt.s32.totalorder %s236_s16, %s236_s16 }
  0x10   :  { %p243_p8 = por %p242_p7, %p241_p6 }
  0x12   :  { %p244_p9 = pnand %p243_p8, %p237_p5 }
  0x14   :  { %247 = shalt.err (!%p244_p9)
}
  0x15   :  { %s276_s17 = smov 128   ;;  %s277_s18 = smov 8  }
  0x16   :  { %31 = dma.hbm_to_vmem [thread:$0]  %s306_s1, 2048, %s26_s12, [#allocation6], %s276_s17, %s276_s17, %s277_s18  }
  0x17   :  { %268 = dma.done.wait [#allocation3], 128  }
  0x18   :  { %269 = vsyncadd [#allocation3], 4294967168 }
  0x19   :  { %270 = dma.done.wait [#allocation6], 2048  }
  0x1a   :  { %271 = vsyncadd [#allocation6], 4294965248  ;;  %v278_v0 = vmov 0.0   ;;  %vm279_vm0 = vmmov 0   ;;  %v60_v1 = vld [vmem:[#allocation5 + $0x78] sm:$0xff]  ;;  %v59_v2 = vld [vmem:[#allocation5 + $0x70] sm:$0xff] }
  0x1b   :  { %166 = vmatprep.subr.mxu0 %v278_v0  ;;  %198 = vmatprep.mubr.msk.f32.mxu0 %vm279_vm0, %v278_v0  ;;  %v58_v3 = vld [vmem:[#allocation5 + $0x68] sm:$0xff]  ;;  %v57_v4 = vld [vmem:[#allocation5 + $0x60] sm:$0xff]  ;;  %v56_v5 = vld [vmem:[#allocation5 + $0x58] sm:$0xff]  ;;  %s280_s0 = smov [#allocation7]  }
  0x1c   :  { %167 = vmatpush3.msra.mxu0 %v60_v1  ;;  %v55_v6 = vld [vmem:[#allocation5 + $0x50] sm:$0xff]  ;;  %v54_v7 = vld [vmem:[#allocation5 + $0x48] sm:$0xff]  ;;  %v53_v8 = vld [vmem:[#allocation5 + $0x40] sm:$0xff]  ;;  %s139_s1 = sshll.u32 %s280_s0, 4  ;;  %s140_s1 = int_to_ptr.vmem [resolvable:$true] %s139_s1 }
  0x1d   :  { %168 = vmatprep.subr.mxu0 %v278_v0  ;;  %v52_v9 = vld [vmem:[#allocation5 + $0x38] sm:$0xff]  ;;  %v51_v10 = vld [vmem:[#allocation5 + $0x30] sm:$0xff]  ;;  %v50_v11 = vld [vmem:[#allocation5 + $0x28] sm:$0xff]  ;;  %s248_s21 = scalar_lea.vmem %s140_s1, 128  ;;  %p253_p11 = scmp.lt.s32.totalorder %s140_s1, %s140_s1 }
  0x1e   :  { %169 = vmatpush3.msra.mxu0 %v59_v2  ;;  %v49_v12 = vld [vmem:[#allocation5 + $0x20] sm:$0xff]  ;;  %v48_v13 = vld [vmem:[#allocation5 + $0x18] sm:$0xff]  ;;  %v47_v14 = vld [vmem:[#allocation5 + $0x10] sm:$0xff]  ;;  %p249_p10 = scmp.ne.s32.totalorder %s140_s1, %s248_s21  ;;  %p254_p12 = scmp.lt.s32.totalorder %s248_s21, %s248_s21 }
  0x1f   :  { %170 = vmatprep.subr.mxu0 %v278_v0  ;;  %v46_v15 = vld [vmem:[#allocation5 + $0x8] sm:$0xff]  ;;  %v45_v16 = vld [vmem:[#allocation5] sm:$0xff]  ;;  %v44_v17 = vld [vmem:[#allocation2] sm:$0xff] }
  0x20   :  { %171 = vmatpush3.msra.mxu0 %v58_v3  ;;  %p255_p13 = por %p254_p12, %p253_p11 }
  0x21   :  { %172 = vmatprep.subr.mxu0 %v278_v0 }
  0x22   :  { %173 = vmatpush3.msra.mxu0 %v57_v4  ;;  %p256_p0 = pnand %p255_p13, %p249_p10 }
  0x23   :  { %174 = vmatprep.subr.mxu0 %v278_v0 }
  0x24   :  { %175 = vmatpush3.msra.mxu0 %v56_v5 }
  0x25   :  { %176 = vmatprep.subr.mxu0 %v278_v0 }
  0x26   :  { %177 = vmatpush3.msra.mxu0 %v55_v6 }
  0x27   :  { %178 = vmatprep.subr.mxu0 %v278_v0 }
  0x28   :  { %179 = vmatpush3.msra.mxu0 %v54_v7 }
  0x29   :  { %180 = vmatprep.subr.mxu0 %v278_v0 }
  0x2a   :  { %181 = vmatpush3.msra.mxu0 %v53_v8 }
  0x2b   :  { %182 = vmatprep.subr.mxu0 %v278_v0 }
  0x2c   :  { %183 = vmatpush3.msra.mxu0 %v52_v9 }
  0x2d   :  { %184 = vmatprep.subr.mxu0 %v278_v0 }
  0x2e   :  { %185 = vmatpush3.msra.mxu0 %v51_v10 }
  0x2f   :  { %186 = vmatprep.subr.mxu0 %v278_v0 }
  0x30   :  { %187 = vmatpush3.msra.mxu0 %v50_v11 }
  0x31   :  { %188 = vmatprep.subr.mxu0 %v278_v0 }
  0x32   :  { %189 = vmatpush3.msra.mxu0 %v49_v12 }
  0x33   :  { %190 = vmatprep.subr.mxu0 %v278_v0 }
  0x34   :  { %191 = vmatpush3.msra.mxu0 %v48_v13 }
  0x35   :  { %192 = vmatprep.subr.mxu0 %v278_v0 }
  0x36   :  { %193 = vmatpush3.msra.mxu0 %v47_v14 }
  0x37   :  { %194 = vmatprep.subr.mxu0 %v278_v0 }
  0x38   :  { %195 = vmatpush3.msra.mxu0 %v46_v15 }
  0x39   :  { %196 = vmatprep.subr.mxu0 %v278_v0 }
  0x3a   :  { %197 = vmatpush3.msra.mxu0 %v45_v16 }
  0x3b   :  { %199 = vmatmul.mubr.f32.vlgmr.msra.gmra.mxu0 %v44_v17 }
  0xfb   :  { %v127_v18 = vpop.f32.mrf.mxu0 }
  0xfc   :  { %132 = vst [vmem:[#allocation7] sm:$0xff] %v127_v18 }
  0xfd   :  { %v200_v19 = vpop.f32.mrf.mxu0 }
  0xfe   :  { %259 = shalt.err (!%p256_p0)
}
  0xff   :  { %142 = dma.vmem_to_hbm [thread:$0]  %s140_s1, 128, %s307_s2, [#allocation4]  }
 0x100   :  { %272 = dma.done.wait [#allocation4], 128  }
 0x101   :  { %273 = vsyncadd [#allocation4], 4294967168 }
 0x102   :  { %146 = vsyncpa [#allocation3], 1 }
 0x103   :  { %147 = vsyncpa [#allocation6], 1 }
 0x104   :  { %148 = vsyncpa [#allocation4], 1 }

</bundles_post_ra>
